<compile_context>
chip_gen: v5e
topology: v5e:2x2
jax: 0.10.0
libtpu: 0.0.40
codegen_flags: <defaults>
</compile_context>

<pallas_src>
import functools

import jax
import jax.numpy as jnp
from jax.experimental import pallas as pl
from jax.experimental.pallas import tpu as pltpu


def _cdiv(a, b):
    return -(-a // b)


def _round_up(v, m):
    return ((v + m - 1) // m) * m


def _mlp_kernel(x_ref, w1_ref, b1_ref, w2_ref, b2_ref, o_ref, *, out_cols):
    """y = W2 @ relu(W1 @ x + b1) + b2, batch on lanes.

    x_ref:  (F, TB)   input tile, batch on lanes
    w1_ref: (H, F)    first weight (PyTorch layout, resident)
    b1_ref: (H, 1)
    w2_ref: (H, O)    second weight, transposed once at prepare time (resident)
    b2_ref: (O, 1)
    o_ref:  (O, TB)   lane-dense output tile
    """
    # Cast once per tile (keeps the VALU free of repeated converts on v5e and
    # makes the accumulation dtype explicit).
    x = x_ref[...].astype(jnp.float32)     # (F, TB)
    w1 = w1_ref[...].astype(jnp.float32)   # (H, F)
    b1 = b1_ref[...]                       # (H, 1)
    b2 = b2_ref[...]                       # (O, 1)
    n_in = x.shape[0]
    hid = w1.shape[0]
    tb = x.shape[1]

    # ---- Linear 1 + ReLU: K = in_features is tiny (2), so skip the MXU
    #      (push/drain latency + systolic padding would dominate) and do
    #      unrolled VPU broadcast-MACs: (H,1) x (1,TB) outer products.
    acc = w1[:, 0:1] * x[0:1, :]           # (H, TB)
    for k in range(1, n_in):               # static unroll: n_in known at trace
        acc = acc + w1[:, k:k + 1] * x[k:k + 1, :]
    h = jnp.maximum(acc + b1, 0.0)         # (H, TB), f32 on the VPU

    # ---- Linear 2
    w2t = w2_ref[...].astype(jnp.float32)  # (H, O)
    if out_cols <= 8:
        # Small O (moons: O == 1): per-output-column sublane reduce on the
        # XLU; output stays lane-dense with batch on lanes, MXU stays idle.
        cols = [
            jnp.sum(h * w2t[:, o:o + 1], axis=0, keepdims=True)  # (1, TB)
            for o in range(out_cols)
        ]
        y = cols[0] if out_cols == 1 else jnp.concatenate(cols, axis=0)
    else:
        # Large O: lane-dense MXU contraction over H (contract axis 0 of both
        # operands so no in-kernel transpose is materialized).
        y = jax.lax.dot_general(
            w2t, h, (((0,), (0,)), ((), ())),
            preferred_element_type=jnp.float32)                   # (O, TB)
    del hid, tb
    o_ref[...] = (y + b2).astype(o_ref.dtype)


def prepare_params(w1, b1, w2, b2):
    """One-time conversion from nn.Linear layout to kernel layout.

    w1: (H, F), b1: (H,), w2: (O, H), b2: (O,)  ->  kernel-ready tuple.
    Call once at init so the forward wrapper does no per-call reshuffling.
    """
    H, _ = w1.shape
    O = w2.shape[0]
    w1_k = jnp.asarray(w1, jnp.float32)                 # (H, F)
    b1_k = jnp.asarray(b1, jnp.float32).reshape(H, 1)   # (H, 1)
    w2_k = jnp.asarray(w2, jnp.float32).T               # (H, O)
    b2_k = jnp.asarray(b2, jnp.float32).reshape(O, 1)   # (O, 1)
    return w1_k, b1_k, w2_k, b2_k


def moon_model_v1_forward(x, params, *, block_b=2048):
    """Fused MLP forward.

    x:      (B, F)  module-layout input
    params: output of prepare_params()
    returns (B, O)
    """
    w1, b1, w2, b2 = params
    B, F = x.shape
    H, O = w2.shape

    LANE = 128
    B_lane = _round_up(B, LANE)

    # Balanced batch tiling (padding never exceeds 127 + tile rounding).
    n_tiles = _cdiv(B_lane, block_b)
    # v7x: once the problem is big enough, make sure the "parallel" batch axis
    # has >= 2 tiles so both TensorCores get work; tiny B stays at one tile.
    if B_lane >= 1024:
        n_tiles = max(n_tiles, 2)
    TB = _round_up(_cdiv(B_lane, n_tiles), LANE)

    # Conservative VMEM budget (safe against v7x's 64 MiB): double-buffered
    # x/out DMA tiles plus the live (H, TB) hidden tile within ~8 MiB.
    budget = 8 * 1024 * 1024
    per_col = (2 * (F + O) + H) * 4
    tb_cap = max(LANE, (budget // per_col) // LANE * LANE)
    TB = min(TB, tb_cap)

    grid_b = _cdiv(B_lane, TB)
    B_pad = grid_b * TB

    # Per-call data movement: one small transpose (+ batch pad) of x.
    x_t = x.T                                            # (F, B)
    if B_pad != B:
        x_t = jnp.pad(x_t, ((0, 0), (0, B_pad - B)))

    # Truthful (padded-traffic) advisory estimate for XLA scheduling.
    itemsize = jnp.dtype(x.dtype).itemsize
    cost = pl.CostEstimate(
        flops=2 * B_pad * (F * H + H * O),
        transcendentals=0,
        bytes_accessed=int(F * B_pad * itemsize
                           + (w1.size + b1.size + w2.size + b2.size) * 4
                           + O * B_pad * itemsize),
    )

    kernel = functools.partial(_mlp_kernel, out_cols=O)

    out_t = pl.pallas_call(
        kernel,
        out_shape=jax.ShapeDtypeStruct((O, B_pad), x.dtype),
        grid_spec=pltpu.PrefetchScalarGridSpec(
            num_scalar_prefetch=0,
            grid=(grid_b,),
            in_specs=[
                pl.BlockSpec((F, TB), lambda i: (0, i)),       # x tile (lane-dense)
                pl.BlockSpec(w1.shape, lambda i: (0, 0)),      # W1 resident
                pl.BlockSpec(b1.shape, lambda i: (0, 0)),      # b1 resident
                pl.BlockSpec(w2.shape, lambda i: (0, 0)),      # W2 resident
                pl.BlockSpec(b2.shape, lambda i: (0, 0)),      # b2 resident
            ],
            out_specs=pl.BlockSpec((O, TB), lambda i: (0, i)), # lane-dense store
        ),
        compiler_params=pltpu.CompilerParams(
            # Batch tiles are independent -> shard across TensorCores (v7x).
            dimension_semantics=("parallel",),
        ),
        cost_estimate=cost,
    )(x_t, w1, b1, w2, b2)

    # Slice away batch padding; back to module layout (B, O).
    return out_t[:, :B].T


def init_params(key, input_features, output_features, hidden_layer):
    """nn.Linear-style init in PyTorch layout: W ~ U(-1/sqrt(fan_in), ...)."""
    k1, k2, k3, k4 = jax.random.split(key, 4)
    bound1 = 1.0 / jnp.sqrt(jnp.array(input_features, jnp.float32))
    bound2 = 1.0 / jnp.sqrt(jnp.array(hidden_layer, jnp.float32))
    w1 = jax.random.uniform(k1, (hidden_layer, input_features), jnp.float32,
                            -bound1, bound1)
    b1 = jax.random.uniform(k2, (hidden_layer,), jnp.float32, -bound1, bound1)
    w2 = jax.random.uniform(k3, (output_features, hidden_layer), jnp.float32,
                            -bound2, bound2)
    b2 = jax.random.uniform(k4, (output_features,), jnp.float32, -bound2, bound2)
    return w1, b1, w2, b2


if __name__ == "__main__":
    # Shapes consistent with a "moons" classifier:
    # batch=8, input_features=2, hidden_layer=32, output_features=1.
    batch, in_f, hidden, out_f = 8, 2, 32, 1

    key = jax.random.PRNGKey(0)
    kx, kp = jax.random.split(key)
    x = jax.random.normal(kx, (batch, in_f), jnp.float32)
    w1, b1, w2, b2 = init_params(kp, in_f, out_f, hidden)

    # One-time parameter prep (hoisted out of the forward path).
    params = prepare_params(w1, b1, w2, b2)

    out = moon_model_v1_forward(x, params)
    out = jax.block_until_ready(out)

    # Reference check (pure JAX, PyTorch semantics): relu(x W1^T + b1) W2^T + b2
    ref = jnp.maximum(x @ w1.T + b1, 0.0) @ w2.T + b2
    assert out.shape == (batch, out_f)
    assert jnp.allclose(out, ref, atol=1e-5, rtol=1e-5)

    print("KERNEL_OK")
</pallas_src>

<mosaic_0001>
module attributes {stable_mosaic.version = 11 : i64} {
  func.func @_mlp_kernel(%arg0: i32, %arg1: memref<2x128xf32, #tpu.memory_space<vmem>>, %arg2: memref<32x2xf32, #tpu.memory_space<vmem>>, %arg3: memref<32x1xf32, #tpu.memory_space<vmem>>, %arg4: memref<32x1xf32, #tpu.memory_space<vmem>>, %arg5: memref<1x1xf32, #tpu.memory_space<vmem>>, %arg6: memref<1x128xf32, #tpu.memory_space<vmem>>) attributes {dimension_semantics = [#tpu.dimension_semantics<parallel>], iteration_bounds = array<i64: 1>, scalar_prefetch = 0 : i64, scratch_operands = 0 : i64, tpu.core_type = #tpu.core_type<tc>, window_params = [{transform_indices = @transform_0, window_bounds = array<i64: 2, 128>}, {pipeline_mode = #tpu.pipeline_mode<synchronous>, transform_indices = @transform_1, window_bounds = array<i64: 32, 2>}, {pipeline_mode = #tpu.pipeline_mode<synchronous>, transform_indices = @transform_2, window_bounds = array<i64: 32, 1>}, {pipeline_mode = #tpu.pipeline_mode<synchronous>, transform_indices = @transform_3, window_bounds = array<i64: 32, 1>}, {pipeline_mode = #tpu.pipeline_mode<synchronous>, transform_indices = @transform_4, window_bounds = array<i64: 1, 1>}, {transform_indices = @transform_5, window_bounds = array<i64: 1, 128>}]} {
    %c0 = arith.constant 0 : index
    %c0_0 = arith.constant 0 : index
    %0 = vector.load %arg1[%c0, %c0_0] : memref<2x128xf32, #tpu.memory_space<vmem>>, vector<2x128xf32>
    %c0_1 = arith.constant 0 : index
    %c0_2 = arith.constant 0 : index
    %1 = vector.load %arg2[%c0_1, %c0_2] : memref<32x2xf32, #tpu.memory_space<vmem>>, vector<32x2xf32>
    %c0_3 = arith.constant 0 : index
    %c0_4 = arith.constant 0 : index
    %2 = vector.load %arg3[%c0_3, %c0_4] : memref<32x1xf32, #tpu.memory_space<vmem>>, vector<32x1xf32>
    %c0_5 = arith.constant 0 : index
    %c0_6 = arith.constant 0 : index
    %3 = vector.load %arg5[%c0_5, %c0_6] : memref<1x1xf32, #tpu.memory_space<vmem>>, vector<1x1xf32>
    %4 = vector.extract_strided_slice %1 {offsets = [0, 0], sizes = [32, 1], strides = [1, 1]} : vector<32x2xf32> to vector<32x1xf32>
    %5 = vector.extract_strided_slice %0 {offsets = [0, 0], sizes = [1, 128], strides = [1, 1]} : vector<2x128xf32> to vector<1x128xf32>
    %6 = vector.broadcast %4 : vector<32x1xf32> to vector<32x128xf32>
    %7 = vector.broadcast %5 : vector<1x128xf32> to vector<32x128xf32>
    %8 = arith.mulf %6, %7 : vector<32x128xf32>
    %9 = vector.extract_strided_slice %1 {offsets = [0, 1], sizes = [32, 1], strides = [1, 1]} : vector<32x2xf32> to vector<32x1xf32>
    %10 = vector.extract_strided_slice %0 {offsets = [1, 0], sizes = [1, 128], strides = [1, 1]} : vector<2x128xf32> to vector<1x128xf32>
    %11 = vector.broadcast %9 : vector<32x1xf32> to vector<32x128xf32>
    %12 = vector.broadcast %10 : vector<1x128xf32> to vector<32x128xf32>
    %13 = arith.mulf %11, %12 : vector<32x128xf32>
    %14 = arith.addf %8, %13 : vector<32x128xf32>
    %15 = vector.broadcast %2 : vector<32x1xf32> to vector<32x128xf32>
    %16 = arith.addf %14, %15 : vector<32x128xf32>
    %cst = arith.constant 0.000000e+00 : f32
    %17 = vector.broadcast %cst : f32 to vector<32x128xf32>
    %18 = arith.maximumf %16, %17 : vector<32x128xf32>
    %c0_7 = arith.constant 0 : index
    %c0_8 = arith.constant 0 : index
    %19 = vector.load %arg4[%c0_7, %c0_8] : memref<32x1xf32, #tpu.memory_space<vmem>>, vector<32x1xf32>
    %20 = vector.broadcast %19 : vector<32x1xf32> to vector<32x128xf32>
    %21 = arith.mulf %18, %20 : vector<32x128xf32>
    %cst_9 = arith.constant dense<0.000000e+00> : vector<128xf32>
    %22 = vector.multi_reduction <add>, %21, %cst_9 [0] : vector<32x128xf32> to vector<128xf32>
    %23 = vector.shape_cast %22 : vector<128xf32> to vector<1x128xf32>
    %24 = vector.broadcast %3 : vector<1x1xf32> to vector<1x128xf32>
    %25 = arith.addf %23, %24 : vector<1x128xf32>
    %c0_10 = arith.constant 0 : index
    %c0_11 = arith.constant 0 : index
    %26 = vector.load %arg6[%c0_10, %c0_11] : memref<1x128xf32, #tpu.memory_space<vmem>>, vector<1x128xf32>
    tpu.vector_store %arg6[%c0_10, %c0_11], %25 {strides = array<i32>} : memref<1x128xf32, #tpu.memory_space<vmem>>, vector<1x128xf32>,
    return
  }
  func.func @transform_0(%arg0: i32) -> (i32, i32) {
    %c0_i32 = arith.constant 0 : i32
    %c0_i32_0 = arith.constant 0 : i32
    return %c0_i32, %arg0 : i32, i32
  }
  func.func @transform_1(%arg0: i32) -> (i32, i32) {
    %c0_i32 = arith.constant 0 : i32
    %c0_i32_0 = arith.constant 0 : i32
    %c0_i32_1 = arith.constant 0 : i32
    return %c0_i32, %c0_i32_0 : i32, i32
  }
  func.func @transform_2(%arg0: i32) -> (i32, i32) {
    %c0_i32 = arith.constant 0 : i32
    %c0_i32_0 = arith.constant 0 : i32
    %c0_i32_1 = arith.constant 0 : i32
    return %c0_i32, %c0_i32_0 : i32, i32
  }
  func.func @transform_3(%arg0: i32) -> (i32, i32) {
    %c0_i32 = arith.constant 0 : i32
    %c0_i32_0 = arith.constant 0 : i32
    %c0_i32_1 = arith.constant 0 : i32
    return %c0_i32, %c0_i32_0 : i32, i32
  }
  func.func @transform_4(%arg0: i32) -> (i32, i32) {
    %c0_i32 = arith.constant 0 : i32
    %c0_i32_0 = arith.constant 0 : i32
    %c0_i32_1 = arith.constant 0 : i32
    return %c0_i32, %c0_i32_0 : i32, i32
  }
  func.func @transform_5(%arg0: i32) -> (i32, i32) {
    %c0_i32 = arith.constant 0 : i32
    %c0_i32_0 = arith.constant 0 : i32
    return %c0_i32, %arg0 : i32, i32
  }
}

</mosaic_0001>

<bundles_post_ra>
// kernel: tpu_custom_call.1
= control target key start
LH: loop header
LB: loop body
LE: loop exit
PB: predicated region body
PF: predicated region fallthrough
CT: control target
= control target key end

     0   :  { %s286_s0 = inlined_call_operand.vmem [shape: f32[2,128], index: 0, kind: input, shape index: {}]   ;;  %s287_s1 = inlined_call_operand.vmem [shape: f32[32,2], index: 1, kind: input, shape index: {}]   ;;  %s288_s2 = inlined_call_operand.vmem [shape: f32[32,1], index: 2, kind: input, shape index: {}]   ;;  %s289_s3 = inlined_call_operand.vmem [shape: f32[32,1], index: 3, kind: input, shape index: {}]   ;;  %s290_s4 = inlined_call_operand.<no memory space> [shape: f32[1,1], index: 4, kind: input, shape index: {}]   ;;  %s291_s5 = inlined_call_operand.hbm [shape: f32[1,128], index: 5, kind: output, shape index: {}]  }
   0x1   :  { %v10_v0 = vstv %s290_s4 }
   0x2   :  { %11 = vst [vmem:[#allocation2] sm:$0x1] %v10_v0 }
   0x3   :  { %v26_v1 = vld [vmem:[%s287_s1 + $0x10] sm:$0xff]  ;;  %v208_v2 = vmov 1   ;;  %v209_v3 = vmov 0   ;;  %v24_v4 = vld [vmem:[%s287_s1] sm:$0xff] }
   0x4   :  { %177 = vset.pattern.permute.xlu0 %v208_v2  ;;  %175 = vset.pattern.permute.xlu1 %v209_v3 }
   0x5   :  { %67 = vperm.xlu0 %177, %v26_v1   ;;  %45 = vperm.xlu1 %175, %v26_v1  }
   0x6   :  { %176 = vset.pattern.permute.xlu2 %v208_v2 }
   0x7   :  { %12 = vsyncpa [#allocation4], 0  ;;  %59 = vperm.xlu2 %176, %v24_v4   ;;  %v27_v5 = vld [vmem:[%s287_s1 + $0x18] sm:$0xff]  ;;  %v25_v6 = vld [vmem:[%s287_s1 + $0x8] sm:$0xff]  ;;  %s163_s20 = sshll.u32 %s291_s5, 4  ;;  %s164_s20 = int_to_ptr.hbm [resolvable:$true] %s163_s20 }
   0x8   :  { %v28_v7 = vld [vmem:[%s288_s2] sm:$0xff]  ;;  %v31_v8 = vld [vmem:[%s288_s2 + $0x18] sm:$0xff]  ;;  %v29_v9 = vld [vmem:[%s288_s2 + $0x8] sm:$0xff] }
   0x9   :  { %v30_v10 = vld [vmem:[%s288_s2 + $0x10] sm:$0xff]  ;;  %v32_v11 = vld [vmem:[#allocation2] sm:$0x1]  ;;  %v112_v13 = vld [vmem:[%s289_s3 + $0x8] sm:$0xff] }
   0xa   :  { %v111_v12 = vld [vmem:[%s289_s3] sm:$0xff]  ;;  %v113_v14 = vld [vmem:[%s289_s3 + $0x10] sm:$0xff]  ;;  %v114_v15 = vld [vmem:[%s289_s3 + $0x18] sm:$0xff] }
   0xb   :  { %v23_v24 = vld [vmem:[%s286_s0] sm:$0x3]  ;;  %s210_s0 = smov [#allocation3]  }
   0xc   :  { %v53_v25 = vperm.slane %v23_v24, 0  ;;  %v74_v28 = vperm.slane %v23_v24, 1  ;;  %s161_s3 = sshll.u32 %s210_s0, 4  ;;  %s162_s3 = int_to_ptr.vmem [resolvable:$true] %s161_s3 }
   0xd   :  { %178 = vset.pattern.permute.xlu0 %v209_v3  ;;  %50 = vperm.xlu1 %175, %v27_v5  }
   0xe   :  { %35 = vperm.xlu0 %178, %v24_v4  }
   0xf   :  { %63 = vperm.xlu2 %176, %v25_v6  }
  0x15   :  { %179 = vset.pattern.permute.xlu1 %v208_v2 }
  0x16   :  { %71 = vperm.xlu1 %179, %v27_v5   ;;  %40 = vperm.xlu0 %178, %v25_v6  }
  0x17   :  { %180 = vset.pattern.permute.xlu2 %v209_v3 }
  0x18   :  { %85 = vperm.xlu2 %180, %v28_v7  }
  0x1e   :  { %181 = vset.pattern.permute.xlu1 %v209_v3  ;;  %100 = vperm.xlu0 %178, %v31_v8  }
  0x1f   :  { %90 = vperm.xlu1 %181, %v29_v9  }
  0x20   :  { %95 = vperm.xlu2 %180, %v30_v10  }
  0x26   :  { %150 = vperm.xlu0 %178, %v32_v11  }
  0x27   :  { %117 = vperm.xlu1 %181, %v111_v12  }
  0x28   :  { %122 = vperm.xlu2 %180, %v112_v13  }
  0x2f   :  { %127 = vperm.xlu1 %181, %v113_v14  }
  0x30   :  { %132 = vperm.xlu2 %180, %v114_v15  }
  0x61   :  { %v60_v16 = vpop.permute.xlu2 %59 }
  0x62   :  { %v75_v31 = vmul.f32 %v74_v28, %v60_v16 }
  0x69   :  { %v64_v18 = vpop.permute.xlu2 %63 }
  0x6a   :  { %v76_v33 = vmul.f32 %v74_v28, %v64_v18 }
  0x72   :  { %v86_v21 = vpop.permute.xlu2 %85 }
  0x77   :  { %v46_v17 = vpop.permute.xlu1 %45  ;;  %v68_v19 = vpop.permute.xlu0 %67 }
  0x78   :  { %v77_v34 = vmul.f32 %v74_v28, %v68_v19  ;;  %v56_v35 = vmul.f32 %v53_v25, %v46_v17 }
  0x7a   :  { %v96_v26 = vpop.permute.xlu2 %95  ;;  %v81_v39 = vadd.f32 %v77_v34, %v56_v35 }
  0x7c   :  { %v105_v47 = vadd.f32 %v96_v26, %v81_v39 }
  0x7e   :  { %v109_v52 = vmax.f32 %v105_v47, 0.0 }
  0x7f   :  { %v51_v20 = vpop.permute.xlu1 %50 }
  0x80   :  { %v36_v22 = vpop.permute.xlu0 %35  ;;  %v57_v40 = vmul.f32 %v53_v25, %v51_v20 }
  0x81   :  { %v54_v29 = vmul.f32 %v53_v25, %v36_v22 }
  0x82   :  { %v123_v41 = vpop.permute.xlu2 %122 }
  0x83   :  { %v79_v36 = vadd.f32 %v75_v31, %v54_v29 }
  0x85   :  { %v103_v43 = vadd.f32 %v86_v21, %v79_v36 }
  0x87   :  { %v107_v50 = vmax.f32 %v103_v43, 0.0 }
  0x88   :  { %v72_v23 = vpop.permute.xlu1 %71  ;;  %v41_v27 = vpop.permute.xlu0 %40 }
  0x89   :  { %v55_v32 = vmul.f32 %v53_v25, %v41_v27  ;;  %v78_v37 = vmul.f32 %v74_v28, %v72_v23 }
  0x8a   :  { %v133_v58 = vpop.permute.xlu2 %132 }
  0x8b   :  { %v80_v38 = vadd.f32 %v76_v33, %v55_v32  ;;  %v82_v46 = vadd.f32 %v78_v37, %v57_v40 }
  0x90   :  { %v101_v44 = vpop.permute.xlu0 %100 }
  0x91   :  { %v91_v30 = vpop.permute.xlu1 %90  ;;  %v106_v48 = vadd.f32 %v101_v44, %v82_v46 }
  0x92   :  { %v104_v42 = vadd.f32 %v91_v30, %v80_v38 }
  0x93   :  { %v110_v53 = vmax.f32 %v106_v48, 0.0 }
  0x94   :  { %v108_v49 = vmax.f32 %v104_v42, 0.0 }
  0x95   :  { %v138_v59 = vmul.f32 %v133_v58, %v110_v53 }
  0x96   :  { %v136_v54 = vmul.f32 %v123_v41, %v108_v49 }
  0x98   :  { %v151_v2 = vpop.permute.xlu0 %150 }
  0x99   :  { %v118_v45 = vpop.permute.xlu1 %117  ;;  %v153_v4 = vperm.slane %v151_v2, 0 }
  0x9a   :  { %v135_v51 = vmul.f32 %v118_v45, %v107_v50 }
  0x9c   :  { %v139_v56 = vadd.f32 %v136_v54, %v135_v51 }
  0xa1   :  { %v128_v55 = vpop.permute.xlu1 %127 }
  0xa2   :  { %v137_v57 = vmul.f32 %v128_v55, %v109_v52 }
  0xa4   :  { %v140_v60 = vadd.f32 %v139_v56, %v137_v57 }
  0xa6   :  { %v141_v61 = vadd.f32 %v140_v60, %v138_v59 }
  0xa8   :  { %v142_v62 = vrot.slane %v141_v61, 4 }
  0xaa   :  { %v143_v63 = vadd.f32 %v142_v62, %v141_v61 }
  0xac   :  { %v144_v0 = vrot.slane %v143_v63, 2 }
  0xae   :  { %v145_v1 = vadd.f32 %v144_v0, %v143_v63 }
  0xb0   :  { %v146_v3 = vrot.slane %v145_v1, 1 }
  0xb2   :  { %v147_v5 = vadd.f32 %v146_v3, %v145_v1 }
  0xb4   :  { %v154_v6 = vadd.f32 %v153_v4, %v147_v5 }
  0xb6   :  { %155 = vst [vmem:[#allocation3] sm:$0x1] %v154_v6 }
  0xb7   :  { %166 = dma.vmem_to_hbm [thread:$0]  %s162_s3, 16, %s164_s20, [#allocation4]  }
  0xb8   :  { %206 = dma.done.wait [#allocation4], 16  }
  0xb9   :  { %207 = vsyncadd [#allocation4], 4294967280 }
  0xba   :  { %171 = vsyncpa [#allocation4], 1 }

</bundles_post_ra>
